<compile_context>
chip_gen: v7x
topology: tpu7x:2x2x1
jax: 0.10.0
libtpu: 0.0.40
codegen_flags: <defaults>
</compile_context>

<pallas_src>
import functools

import jax
import jax.numpy as jnp
from jax.experimental import pallas as pl
from jax.experimental.pallas import tpu as pltpu

_ACTIVATIONS = {
    "tanh": jnp.tanh,
    "relu": lambda v: jnp.maximum(v, 0.0),
    "sigmoid": jax.nn.sigmoid,
    "swish": jax.nn.silu,
}


def _round_up(n, m):
    return ((n + m - 1) // m) * m


def _cdiv(a, b):
    return (a + b - 1) // b


def _device_kind():
    try:
        return jax.devices()[0].device_kind.lower()
    except Exception:
        return ""


def _is_v6_or_newer():
    k = _device_kind()
    return ("v6" in k) or ("v7" in k) or ("tpu7" in k) or ("trillium" in k)


def _looks_like_v7():
    k = _device_kind()
    return ("v7" in k) or ("tpu7" in k)


def _preferred_lane():
    # v6e / v7x have a 2x256x256 MXU: 256-wide rows (8 samples) fill it.
    # v5e (4x128x128) and older: 128 lanes (4 samples).
    return 256 if _is_v6_or_newer() else 128


def _choose_tm(n_rows, tm_max, min_grid=1):
    """Batch tile over PACKED rows: as large as requested, never larger than
    the 8-padded row count; only force extra grid steps when the chip actually
    has 2 TensorCores (v7x)."""
    n8 = _round_up(max(n_rows, 1), 8)
    tm = min(_round_up(max(tm_max, 8), 8), n8)
    if min_grid > 1 and n8 > 8 * (min_grid - 1):
        tm = min(tm, max(8, _round_up(_cdiv(n8, min_grid), 8)))
    return tm


def _mlp_kernel(x_ref, w0_ref, w_ref, b_ref, o_ref, *,
                k0, num_mats, use_bf16, bf16_elementwise, activation):
    """Fused packed MLP.

    x_ref  : (TM, k0)            packed inputs, k0 = G*num_inputs (f32)
    w0_ref : (k0_pad, LANE)      block-diag layer-0 weights (f32)
    w_ref  : (L-1, LANE, LANE)   block-diag weights, layers 1..L-1 (f32/bf16)
    b_ref  : (L, 1, LANE)        packed biases (f32)
    o_ref  : (TM, LANE)          packed outputs (sample g -> lanes g*slot+...)
    """
    act = _ACTIVATIONS[activation]
    lane = w_ref.shape[-1]
    tm = x_ref.shape[0]

    x_in = x_ref[...]                       # (TM, k0) f32, tiny
    w0 = w0_ref[...]                        # (k0_pad, LANE) f32

    # ---- Layer 0 on the VPU: K is tiny, broadcast-FMAs beat a lane-sparse
    # MXU dot and keep the raw coordinates in f32 (PINN gradient fidelity).
    h = x_in[:, 0:1] * w0[0:1, :] + b_ref[0]            # (TM, LANE) f32
    for j in range(1, k0):                                # static unroll
        h = h + x_in[:, j:j + 1] * w0[j:j + 1, :]
    h = act(h)
    if bf16_elementwise:
        h = h.astype(jnp.bfloat16)

    # ---- Layers 1..L-2 (hidden) and L-1 (linear output) on the MXU.
    for i in range(num_mats):                             # static unroll (L-1)
        lhs = h
        if use_bf16 and lhs.dtype != jnp.bfloat16:
            lhs = lhs.astype(jnp.bfloat16)
        h = jnp.dot(lhs, w_ref[i], preferred_element_type=jnp.float32)
        h = h + b_ref[i + 1]
        if i < num_mats - 1:
            h = act(h.astype(jnp.bfloat16)) if bf16_elementwise else act(h)

    o_ref[...] = h.astype(o_ref.dtype)
    # TODO(synk): optional epilogue compacting the G*num_outputs valid lanes
    # into a narrow (TM, G*num_outputs) store for v5e (saves output HBM bytes
    # at the cost of masked vst); lane-dense full-width store kept here.


def pack_params(weights, biases, *, lane=None, use_bf16=True):
    """Zero-pad, replicate block-diagonally (G samples / row) and stack the
    layer parameters ONCE (hoisted out of the forward pass).

    weights : list of (in_dim, out_dim) arrays (x @ W convention)
    biases  : list of (out_dim,) arrays
    returns : (params dict {w0, w, b}, meta dict)
    """
    num_layers = len(weights)
    assert num_layers >= 2 and len(biases) == num_layers
    dims = [w.shape[0] for w in weights] + [weights[-1].shape[1]]
    for i, (w, b) in enumerate(zip(weights, biases)):
        assert w.shape == (dims[i], dims[i + 1]), "inconsistent layer dims"
        assert b.shape == (dims[i + 1],), "inconsistent bias dims"

    max_dim = max(dims)
    slot = _round_up(max_dim, 8)            # lanes reserved per sample
    if lane is None:
        lane = _preferred_lane()
    lane = max(lane, _round_up(slot, 128))  # guarantees every layer fits
    assert slot <= lane, "layer width exceeds lane padding"
    G = lane // slot                        # samples packed per lane row
    num_inputs, num_outputs = dims[0], dims[-1]
    k0 = G * num_inputs
    k0_pad = _round_up(k0, 8)
    w_dtype = jnp.bfloat16 if use_bf16 else jnp.float32

    # Layer-0 weights: block g maps packed-input cols [g*ni, (g+1)*ni) to
    # lanes [g*slot, g*slot+dims[1]).  Kept f32 (tiny; coordinate precision).
    w0 = jnp.zeros((k0_pad, lane), jnp.float32)
    w0_src = jnp.asarray(weights[0], jnp.float32)
    b_stack = jnp.zeros((num_layers, 1, lane), jnp.float32)
    for g in range(G):
        w0 = w0.at[g * num_inputs:(g + 1) * num_inputs,
                   g * slot:g * slot + dims[1]].set(w0_src)
        b_stack = b_stack.at[0, 0, g * slot:g * slot + dims[1]].set(
            jnp.asarray(biases[0], jnp.float32))

    # Layers 1..L-1: block-diagonal (lane, lane) with G copies of W_i.
    num_mats = num_layers - 1
    w_stack = jnp.zeros((num_mats, lane, lane), w_dtype)
    for i in range(1, num_layers):
        wi = jnp.asarray(weights[i], w_dtype)
        bi = jnp.asarray(biases[i], jnp.float32)
        din, dout = dims[i], dims[i + 1]
        for g in range(G):
            w_stack = w_stack.at[i - 1,
                                 g * slot:g * slot + din,
                                 g * slot:g * slot + dout].set(wi)
            b_stack = b_stack.at[i, 0, g * slot:g * slot + dout].set(bi)

    meta = dict(lane=lane, slot=slot, G=G, k0=k0,
                num_inputs=num_inputs, num_outputs=num_outputs,
                num_layers=num_layers, use_bf16=use_bf16)
    return dict(w0=w0, w=w_stack, b=b_stack), meta


def physics_network_forward(x, packed, meta, *, tm=2048, activation="tanh",
                            bf16_elementwise=None):
    """Run the PINN MLP forward pass via a single fused Pallas kernel.

    x      : (N, num_inputs) float32
    packed : params dict from pack_params()
    meta   : meta dict from pack_params()
    returns: (N, num_outputs) float32
    """
    lane, slot, G = meta["lane"], meta["slot"], meta["G"]
    k0, ni, no = meta["k0"], meta["num_inputs"], meta["num_outputs"]
    num_layers, use_bf16 = meta["num_layers"], meta["use_bf16"]
    num_mats = num_layers - 1
    activation = activation.lower()
    if activation not in _ACTIVATIONS:
        activation = "tanh"
    if bf16_elementwise is None:
        # bf16 VPU/EUP only exists on v6e/v7x; keep f32 elementwise elsewhere.
        bf16_elementwise = bool(use_bf16) and _is_v6_or_newer()

    n = x.shape[0]
    assert x.shape[1] == ni
    n_rows = _cdiv(max(n, 1), G)
    tm_eff = _choose_tm(n_rows, tm, min_grid=2 if _looks_like_v7() else 1)
    n_rows_pad = _round_up(n_rows, tm_eff)

    # Narrow packed input (8 B/sample) — no 128-wide zero slab in HBM.
    x_flat = jnp.zeros((n_rows_pad * G, ni), jnp.float32).at[:n].set(
        x.astype(jnp.float32))
    x_packed = x_flat.reshape(n_rows_pad, k0)

    w0, w_stack, b_stack = packed["w0"], packed["w"], packed["b"]
    k0_pad = w0.shape[0]

    kernel = functools.partial(_mlp_kernel, k0=k0, num_mats=num_mats,
                               use_bf16=use_bf16,
                               bf16_elementwise=bf16_elementwise,
                               activation=activation)

    # Rough VMEM budget: double-buffered in/out tiles + weight/bias stacks
    # (constant index_map, still default-double-buffered) + a few live temps.
    act_bytes = tm_eff * lane * 4
    vmem_bytes = (6 * act_bytes
                  + 2 * int(w_stack.size) * w_stack.dtype.itemsize
                  + 2 * (int(b_stack.size) + int(w0.size)) * 4
                  + 2 * tm_eff * k0_pad * 4)
    cp = dict(dimension_semantics=("parallel",))
    if vmem_bytes > 12 * 1024 * 1024:       # only very large tm needs a bump
        cp["vmem_limit_bytes"] = min(int(vmem_bytes * 2), 64 * 1024 * 1024)

    out_p = pl.pallas_call(
        kernel,
        out_shape=jax.ShapeDtypeStruct((n_rows_pad, lane), jnp.float32),
        grid_spec=pltpu.PrefetchScalarGridSpec(
            num_scalar_prefetch=0,
            grid=(n_rows_pad // tm_eff,),
            in_specs=[
                pl.BlockSpec((tm_eff, k0), lambda i: (i, 0)),
                # constant index maps -> weights/biases are DMA'd only once.
                # (pipeline_mode=pl.Buffered(1) would drop their dead second
                #  buffer; minor, left at the portable default.)
                pl.BlockSpec((k0_pad, lane), lambda i: (0, 0)),
                pl.BlockSpec((num_mats, lane, lane), lambda i: (0, 0, 0)),
                pl.BlockSpec((num_layers, 1, lane), lambda i: (0, 0, 0)),
            ],
            out_specs=pl.BlockSpec((tm_eff, lane), lambda i: (i, 0)),
        ),
        compiler_params=pltpu.CompilerParams(**cp),
    )(x_packed, w0, w_stack, b_stack)

    # Un-pack: sample r*G+g lives at out_p[r, g*slot : g*slot+num_outputs].
    out = out_p[:, :G * slot].reshape(n_rows_pad, G, slot)[:, :, :no]
    return out.reshape(n_rows_pad * G, no)[:n]


def init_params(key, num_inputs=2, layers=(32, 32, 32, 32, 32), num_outputs=2):
    """Deterministic init mimicking PyTorch nn.Linear default
    (uniform(-1/sqrt(fan_in), 1/sqrt(fan_in)) for both W and b).
    Weights stored as (in_dim, out_dim) so the kernel computes x @ W."""
    dims = [num_inputs] + list(layers) + [num_outputs]
    weights, biases = [], []
    for i in range(len(dims) - 1):
        key, kw, kb = jax.random.split(key, 3)
        bound = 1.0 / (dims[i] ** 0.5)
        weights.append(jax.random.uniform(kw, (dims[i], dims[i + 1]),
                                          jnp.float32, -bound, bound))
        biases.append(jax.random.uniform(kb, (dims[i + 1],),
                                         jnp.float32, -bound, bound))
    return weights, biases


def reference_forward(x, weights, biases):
    h = x
    for i, (w, b) in enumerate(zip(weights, biases)):
        h = h @ w + b
        if i < len(weights) - 1:
            h = jnp.tanh(h)
    return h


if __name__ == "__main__":
    key = jax.random.PRNGKey(0)
    key, kx = jax.random.split(key)

    batch, num_inputs, num_outputs = 64, 2, 2
    x = jax.random.normal(kx, (batch, num_inputs), jnp.float32)  # (t, x) pairs

    weights, biases = init_params(key, num_inputs=num_inputs,
                                  layers=(32, 32, 32, 32, 32),
                                  num_outputs=num_outputs)
    ref = reference_forward(x, weights, biases)

    # f32 validation path (tight tolerance, f32 elementwise everywhere).
    p32, m32 = pack_params(weights, biases, use_bf16=False)
    out_f32 = jax.block_until_ready(
        physics_network_forward(x, p32, m32, bf16_elementwise=False))
    assert out_f32.shape == (batch, num_outputs)
    assert jnp.allclose(out_f32, ref, atol=5e-5, rtol=5e-5), "f32 mismatch"

    # bf16 MXU path — the default / fast path on every TPU generation.
    pbf, mbf = pack_params(weights, biases, use_bf16=True)
    out_bf = jax.block_until_ready(physics_network_forward(x, pbf, mbf))
    assert out_bf.shape == (batch, num_outputs)
    assert jnp.allclose(out_bf, ref, atol=5e-2, rtol=5e-2), "bf16 mismatch"

    print("KERNEL_OK")
</pallas_src>

<mosaic_0001>
module attributes {stable_mosaic.version = 11 : i64} {
  func.func @_mlp_kernel(%arg0: i32, %arg1: memref<16x8xf32, #tpu.memory_space<vmem>>, %arg2: memref<8x128xf32, #tpu.memory_space<vmem>>, %arg3: memref<5x128x128xf32, #tpu.memory_space<vmem>>, %arg4: memref<6x1x128xf32, #tpu.memory_space<vmem>>, %arg5: memref<16x128xf32, #tpu.memory_space<vmem>>) attributes {dimension_semantics = [#tpu.dimension_semantics<parallel>], iteration_bounds = array<i64: 1>, scalar_prefetch = 0 : i64, scratch_operands = 0 : i64, tpu.core_type = #tpu.core_type<tc>, window_params = [{transform_indices = @transform_0, window_bounds = array<i64: 16, 8>}, {pipeline_mode = #tpu.pipeline_mode<synchronous>, transform_indices = @transform_1, window_bounds = array<i64: 8, 128>}, {pipeline_mode = #tpu.pipeline_mode<synchronous>, transform_indices = @transform_2, window_bounds = array<i64: 5, 128, 128>}, {pipeline_mode = #tpu.pipeline_mode<synchronous>, transform_indices = @transform_3, window_bounds = array<i64: 6, 1, 128>}, {transform_indices = @transform_4, window_bounds = array<i64: 16, 128>}]} {
    %c0 = arith.constant 0 : index
    %c0_0 = arith.constant 0 : index
    %0 = vector.load %arg1[%c0, %c0_0] : memref<16x8xf32, #tpu.memory_space<vmem>>, vector<16x8xf32>
    %c0_1 = arith.constant 0 : index
    %c0_2 = arith.constant 0 : index
    %1 = vector.load %arg2[%c0_1, %c0_2] : memref<8x128xf32, #tpu.memory_space<vmem>>, vector<8x128xf32>
    %2 = vector.extract_strided_slice %0 {offsets = [0, 0], sizes = [16, 1], strides = [1, 1]} : vector<16x8xf32> to vector<16x1xf32>
    %3 = vector.extract_strided_slice %1 {offsets = [0, 0], sizes = [1, 128], strides = [1, 1]} : vector<8x128xf32> to vector<1x128xf32>
    %4 = vector.broadcast %2 : vector<16x1xf32> to vector<16x128xf32>
    %5 = vector.broadcast %3 : vector<1x128xf32> to vector<16x128xf32>
    %6 = arith.mulf %4, %5 : vector<16x128xf32>
    %c0_3 = arith.constant 0 : index
    %c0_4 = arith.constant 0 : index
    %c0_5 = arith.constant 0 : index
    %7 = vector.load %arg4[%c0_3, %c0_4, %c0_5] : memref<6x1x128xf32, #tpu.memory_space<vmem>>, vector<1x1x128xf32>
    %8 = vector.shape_cast %7 : vector<1x1x128xf32> to vector<1x128xf32>
    %9 = vector.broadcast %8 : vector<1x128xf32> to vector<16x128xf32>
    %10 = arith.addf %6, %9 : vector<16x128xf32>
    %11 = vector.extract_strided_slice %0 {offsets = [0, 1], sizes = [16, 1], strides = [1, 1]} : vector<16x8xf32> to vector<16x1xf32>
    %12 = vector.extract_strided_slice %1 {offsets = [1, 0], sizes = [1, 128], strides = [1, 1]} : vector<8x128xf32> to vector<1x128xf32>
    %13 = vector.broadcast %11 : vector<16x1xf32> to vector<16x128xf32>
    %14 = vector.broadcast %12 : vector<1x128xf32> to vector<16x128xf32>
    %15 = arith.mulf %13, %14 : vector<16x128xf32>
    %16 = arith.addf %10, %15 : vector<16x128xf32>
    %17 = vector.extract_strided_slice %0 {offsets = [0, 2], sizes = [16, 1], strides = [1, 1]} : vector<16x8xf32> to vector<16x1xf32>
    %18 = vector.extract_strided_slice %1 {offsets = [2, 0], sizes = [1, 128], strides = [1, 1]} : vector<8x128xf32> to vector<1x128xf32>
    %19 = vector.broadcast %17 : vector<16x1xf32> to vector<16x128xf32>
    %20 = vector.broadcast %18 : vector<1x128xf32> to vector<16x128xf32>
    %21 = arith.mulf %19, %20 : vector<16x128xf32>
    %22 = arith.addf %16, %21 : vector<16x128xf32>
    %23 = vector.extract_strided_slice %0 {offsets = [0, 3], sizes = [16, 1], strides = [1, 1]} : vector<16x8xf32> to vector<16x1xf32>
    %24 = vector.extract_strided_slice %1 {offsets = [3, 0], sizes = [1, 128], strides = [1, 1]} : vector<8x128xf32> to vector<1x128xf32>
    %25 = vector.broadcast %23 : vector<16x1xf32> to vector<16x128xf32>
    %26 = vector.broadcast %24 : vector<1x128xf32> to vector<16x128xf32>
    %27 = arith.mulf %25, %26 : vector<16x128xf32>
    %28 = arith.addf %22, %27 : vector<16x128xf32>
    %29 = vector.extract_strided_slice %0 {offsets = [0, 4], sizes = [16, 1], strides = [1, 1]} : vector<16x8xf32> to vector<16x1xf32>
    %30 = vector.extract_strided_slice %1 {offsets = [4, 0], sizes = [1, 128], strides = [1, 1]} : vector<8x128xf32> to vector<1x128xf32>
    %31 = vector.broadcast %29 : vector<16x1xf32> to vector<16x128xf32>
    %32 = vector.broadcast %30 : vector<1x128xf32> to vector<16x128xf32>
    %33 = arith.mulf %31, %32 : vector<16x128xf32>
    %34 = arith.addf %28, %33 : vector<16x128xf32>
    %35 = vector.extract_strided_slice %0 {offsets = [0, 5], sizes = [16, 1], strides = [1, 1]} : vector<16x8xf32> to vector<16x1xf32>
    %36 = vector.extract_strided_slice %1 {offsets = [5, 0], sizes = [1, 128], strides = [1, 1]} : vector<8x128xf32> to vector<1x128xf32>
    %37 = vector.broadcast %35 : vector<16x1xf32> to vector<16x128xf32>
    %38 = vector.broadcast %36 : vector<1x128xf32> to vector<16x128xf32>
    %39 = arith.mulf %37, %38 : vector<16x128xf32>
    %40 = arith.addf %34, %39 : vector<16x128xf32>
    %41 = vector.extract_strided_slice %0 {offsets = [0, 6], sizes = [16, 1], strides = [1, 1]} : vector<16x8xf32> to vector<16x1xf32>
    %42 = vector.extract_strided_slice %1 {offsets = [6, 0], sizes = [1, 128], strides = [1, 1]} : vector<8x128xf32> to vector<1x128xf32>
    %43 = vector.broadcast %41 : vector<16x1xf32> to vector<16x128xf32>
    %44 = vector.broadcast %42 : vector<1x128xf32> to vector<16x128xf32>
    %45 = arith.mulf %43, %44 : vector<16x128xf32>
    %46 = arith.addf %40, %45 : vector<16x128xf32>
    %47 = vector.extract_strided_slice %0 {offsets = [0, 7], sizes = [16, 1], strides = [1, 1]} : vector<16x8xf32> to vector<16x1xf32>
    %48 = vector.extract_strided_slice %1 {offsets = [7, 0], sizes = [1, 128], strides = [1, 1]} : vector<8x128xf32> to vector<1x128xf32>
    %49 = vector.broadcast %47 : vector<16x1xf32> to vector<16x128xf32>
    %50 = vector.broadcast %48 : vector<1x128xf32> to vector<16x128xf32>
    %51 = arith.mulf %49, %50 : vector<16x128xf32>
    %52 = arith.addf %46, %51 : vector<16x128xf32>
    %53 = math.tanh %52 : vector<16x128xf32>
    %c0_6 = arith.constant 0 : index
    %c0_7 = arith.constant 0 : index
    %c0_8 = arith.constant 0 : index
    %54 = vector.load %arg3[%c0_6, %c0_7, %c0_8] : memref<5x128x128xf32, #tpu.memory_space<vmem>>, vector<1x128x128xf32>
    %55 = vector.shape_cast %54 : vector<1x128x128xf32> to vector<128x128xf32>
    %cst = arith.constant dense<0.000000e+00> : vector<16x128xf32>
    %56 = tpu.matmul %53, %55, %cst {dimension_numbers = #tpu.dot_dimension_numbers<[1], [0], [0], [1], [0, 0, 1, 1], [], []>} : vector<16x128xf32>, vector<128x128xf32>, vector<16x128xf32> -> vector<16x128xf32>
    %c1 = arith.constant 1 : index
    %c0_9 = arith.constant 0 : index
    %c0_10 = arith.constant 0 : index
    %57 = vector.load %arg4[%c1, %c0_9, %c0_10] : memref<6x1x128xf32, #tpu.memory_space<vmem>>, vector<1x1x128xf32>
    %58 = vector.shape_cast %57 : vector<1x1x128xf32> to vector<1x128xf32>
    %59 = vector.broadcast %58 : vector<1x128xf32> to vector<16x128xf32>
    %60 = arith.addf %56, %59 : vector<16x128xf32>
    %61 = math.tanh %60 : vector<16x128xf32>
    %c1_11 = arith.constant 1 : index
    %c0_12 = arith.constant 0 : index
    %c0_13 = arith.constant 0 : index
    %62 = vector.load %arg3[%c1_11, %c0_12, %c0_13] : memref<5x128x128xf32, #tpu.memory_space<vmem>>, vector<1x128x128xf32>
    %63 = vector.shape_cast %62 : vector<1x128x128xf32> to vector<128x128xf32>
    %cst_14 = arith.constant dense<0.000000e+00> : vector<16x128xf32>
    %64 = tpu.matmul %61, %63, %cst_14 {dimension_numbers = #tpu.dot_dimension_numbers<[1], [0], [0], [1], [0, 0, 1, 1], [], []>} : vector<16x128xf32>, vector<128x128xf32>, vector<16x128xf32> -> vector<16x128xf32>
    %c2 = arith.constant 2 : index
    %c0_15 = arith.constant 0 : index
    %c0_16 = arith.constant 0 : index
    %65 = vector.load %arg4[%c2, %c0_15, %c0_16] : memref<6x1x128xf32, #tpu.memory_space<vmem>>, vector<1x1x128xf32>
    %66 = vector.shape_cast %65 : vector<1x1x128xf32> to vector<1x128xf32>
    %67 = vector.broadcast %66 : vector<1x128xf32> to vector<16x128xf32>
    %68 = arith.addf %64, %67 : vector<16x128xf32>
    %69 = math.tanh %68 : vector<16x128xf32>
    %c2_17 = arith.constant 2 : index
    %c0_18 = arith.constant 0 : index
    %c0_19 = arith.constant 0 : index
    %70 = vector.load %arg3[%c2_17, %c0_18, %c0_19] : memref<5x128x128xf32, #tpu.memory_space<vmem>>, vector<1x128x128xf32>
    %71 = vector.shape_cast %70 : vector<1x128x128xf32> to vector<128x128xf32>
    %cst_20 = arith.constant dense<0.000000e+00> : vector<16x128xf32>
    %72 = tpu.matmul %69, %71, %cst_20 {dimension_numbers = #tpu.dot_dimension_numbers<[1], [0], [0], [1], [0, 0, 1, 1], [], []>} : vector<16x128xf32>, vector<128x128xf32>, vector<16x128xf32> -> vector<16x128xf32>
    %c3 = arith.constant 3 : index
    %c0_21 = arith.constant 0 : index
    %c0_22 = arith.constant 0 : index
    %73 = vector.load %arg4[%c3, %c0_21, %c0_22] : memref<6x1x128xf32, #tpu.memory_space<vmem>>, vector<1x1x128xf32>
    %74 = vector.shape_cast %73 : vector<1x1x128xf32> to vector<1x128xf32>
    %75 = vector.broadcast %74 : vector<1x128xf32> to vector<16x128xf32>
    %76 = arith.addf %72, %75 : vector<16x128xf32>
    %77 = math.tanh %76 : vector<16x128xf32>
    %c3_23 = arith.constant 3 : index
    %c0_24 = arith.constant 0 : index
    %c0_25 = arith.constant 0 : index
    %78 = vector.load %arg3[%c3_23, %c0_24, %c0_25] : memref<5x128x128xf32, #tpu.memory_space<vmem>>, vector<1x128x128xf32>
    %79 = vector.shape_cast %78 : vector<1x128x128xf32> to vector<128x128xf32>
    %cst_26 = arith.constant dense<0.000000e+00> : vector<16x128xf32>
    %80 = tpu.matmul %77, %79, %cst_26 {dimension_numbers = #tpu.dot_dimension_numbers<[1], [0], [0], [1], [0, 0, 1, 1], [], []>} : vector<16x128xf32>, vector<128x128xf32>, vector<16x128xf32> -> vector<16x128xf32>
    %c4 = arith.constant 4 : index
    %c0_27 = arith.constant 0 : index
    %c0_28 = arith.constant 0 : index
    %81 = vector.load %arg4[%c4, %c0_27, %c0_28] : memref<6x1x128xf32, #tpu.memory_space<vmem>>, vector<1x1x128xf32>
    %82 = vector.shape_cast %81 : vector<1x1x128xf32> to vector<1x128xf32>
    %83 = vector.broadcast %82 : vector<1x128xf32> to vector<16x128xf32>
    %84 = arith.addf %80, %83 : vector<16x128xf32>
    %85 = math.tanh %84 : vector<16x128xf32>
    %c4_29 = arith.constant 4 : index
    %c0_30 = arith.constant 0 : index
    %c0_31 = arith.constant 0 : index
    %86 = vector.load %arg3[%c4_29, %c0_30, %c0_31] : memref<5x128x128xf32, #tpu.memory_space<vmem>>, vector<1x128x128xf32>
    %87 = vector.shape_cast %86 : vector<1x128x128xf32> to vector<128x128xf32>
    %cst_32 = arith.constant dense<0.000000e+00> : vector<16x128xf32>
    %88 = tpu.matmul %85, %87, %cst_32 {dimension_numbers = #tpu.dot_dimension_numbers<[1], [0], [0], [1], [0, 0, 1, 1], [], []>} : vector<16x128xf32>, vector<128x128xf32>, vector<16x128xf32> -> vector<16x128xf32>
    %c5 = arith.constant 5 : index
    %c0_33 = arith.constant 0 : index
    %c0_34 = arith.constant 0 : index
    %89 = vector.load %arg4[%c5, %c0_33, %c0_34] : memref<6x1x128xf32, #tpu.memory_space<vmem>>, vector<1x1x128xf32>
    %90 = vector.shape_cast %89 : vector<1x1x128xf32> to vector<1x128xf32>
    %91 = vector.broadcast %90 : vector<1x128xf32> to vector<16x128xf32>
    %92 = arith.addf %88, %91 : vector<16x128xf32>
    %c0_35 = arith.constant 0 : index
    %c0_36 = arith.constant 0 : index
    %93 = vector.load %arg5[%c0_35, %c0_36] : memref<16x128xf32, #tpu.memory_space<vmem>>, vector<16x128xf32>
    tpu.vector_store %arg5[%c0_35, %c0_36], %92 {strides = array<i32>} : memref<16x128xf32, #tpu.memory_space<vmem>>, vector<16x128xf32>,
    return
  }
  func.func @transform_0(%arg0: i32) -> (i32, i32) {
    %c0_i32 = arith.constant 0 : i32
    %c0_i32_0 = arith.constant 0 : i32
    return %arg0, %c0_i32 : i32, i32
  }
  func.func @transform_1(%arg0: i32) -> (i32, i32) {
    %c0_i32 = arith.constant 0 : i32
    %c0_i32_0 = arith.constant 0 : i32
    %c0_i32_1 = arith.constant 0 : i32
    return %c0_i32, %c0_i32_0 : i32, i32
  }
  func.func @transform_2(%arg0: i32) -> (i32, i32, i32) {
    %c0_i32 = arith.constant 0 : i32
    %c0_i32_0 = arith.constant 0 : i32
    %c0_i32_1 = arith.constant 0 : i32
    %c0_i32_2 = arith.constant 0 : i32
    return %c0_i32, %c0_i32_0, %c0_i32_1 : i32, i32, i32
  }
  func.func @transform_3(%arg0: i32) -> (i32, i32, i32) {
    %c0_i32 = arith.constant 0 : i32
    %c0_i32_0 = arith.constant 0 : i32
    %c0_i32_1 = arith.constant 0 : i32
    %c0_i32_2 = arith.constant 0 : i32
    return %c0_i32, %c0_i32_0, %c0_i32_1 : i32, i32, i32
  }
  func.func @transform_4(%arg0: i32) -> (i32, i32) {
    %c0_i32 = arith.constant 0 : i32
    %c0_i32_0 = arith.constant 0 : i32
    return %arg0, %c0_i32 : i32, i32
  }
}

</mosaic_0001>

<bundles_post_ra>
// kernel: tpu_custom_call.1
= control target key start
LH: loop header
LB: loop body
LE: loop exit
PB: predicated region body
PF: predicated region fallthrough
CT: control target
= control target key end

     0   :  { %9 = vsyncpa [#allocation3], 0  ;;  %s1323_s0 = inlined_call_operand.vmem [shape: f32[16,8], index: 0, kind: input, shape index: {}]   ;;  %s1324_s1 = inlined_call_operand.vmem [shape: f32[8,128], index: 1, kind: input, shape index: {}]   ;;  %s1325_s2 = inlined_call_operand.hbm [shape: f32[5,128,128], index: 2, kind: input, shape index: {}]   ;;  %s1326_s3 = inlined_call_operand.vmem [shape: f32[6,1,128], index: 3, kind: input, shape index: {}]   ;;  %s1327_s4 = inlined_call_operand.hbm [shape: f32[16,128], index: 4, kind: output, shape index: {}]  }
   0x1   :  { %10 = vsyncpa [#allocation4], 0  ;;  %s1229_s15 = smov [#allocation2]   ;;  %s1181_s19 = scalar_lea.hbm %s1325_s2, 10240 }
   0x2   :  { %s20_s16 = sshll.u32 %s1229_s15, 4  ;;  %p1182_p0 = scmp.ne.s32.totalorder %s1325_s2, %s1181_s19  ;;  %s21_s16 = int_to_ptr.vmem [resolvable:$true] %s20_s16 }
   0x3   :  { %p1185_p1 = scmp.lt.u32.totalorder %s1181_s19, %s1325_s2 }
   0x5   :  { %p1187_p2 = pnand %p1185_p1, %p1182_p0 }
   0x7   :  { %1190 = shalt.err (!%p1187_p2)
}
   0x8   :  { %s1191_s24 = scalar_lea.vmem %s21_s16, 10240  ;;  %p1196_p4 = scmp.lt.s32.totalorder %s21_s16, %s21_s16 }
   0x9   :  { %p1192_p3 = scmp.ne.s32.totalorder %s21_s16, %s1191_s24  ;;  %p1197_p5 = scmp.lt.s32.totalorder %s1191_s24, %s1191_s24 }
   0xb   :  { %p1198_p6 = por %p1197_p5, %p1196_p4 }
   0xd   :  { %p1199_p7 = pnand %p1198_p6, %p1192_p3 }
   0xf   :  { %1202 = shalt.err (!%p1199_p7)
}
  0x10   :  { %s1230_s25 = smov 128   ;;  %s1231_s26 = smov 8  }
  0x11   :  { %26 = dma.hbm_to_vmem [thread:$0]  %s1325_s2, 10240, %s21_s16, [#allocation3], %s1230_s25, %s1230_s25, %s1231_s26  }
  0x12   :  { %1225 = dma.done.wait [#allocation3], 10240  }
  0x13   :  { %1226 = vsyncadd [#allocation3], 4294957056  ;;  %v1232_v0 = vmov 1   ;;  %v1233_v1 = vmov 0   ;;  %v32_v2 = vld [vmem:[%s1323_s0] sm:$0xff]  ;;  %v33_v3 = vld [vmem:[%s1323_s0 + $0x8] sm:$0xff]  ;;  %v45_v47 = vlaneseq }
  0x14   :  { %1149 = vset.pattern.permute.xlu1 %v1232_v0  ;;  %1148 = vset.pattern.permute.xlu0 %v1233_v1  ;;  %v1234_v4 = vmov 2   ;;  %v1235_v5 = vmov 3   ;;  %v1236_v6 = vmov 4   ;;  %v1237_v7 = vmov 5   ;;  %v174_v8 = vld [vmem:[#allocation2] sm:$0xff]  ;;  %v175_v9 = vld [vmem:[#allocation2 + $0x8] sm:$0xff] }
  0x15   :  { %61 = vperm.xlu1 %1149, %v32_v2   ;;  %37 = vperm.xlu0 %1148, %v32_v2   ;;  %v1238_v10 = vmov 6   ;;  %v976_v11 = vpack.c.bf16 %v175_v9, %v174_v8  ;;  %v176_v12 = vld [vmem:[#allocation2 + $0x10] sm:$0xff]  ;;  %v177_v13 = vld [vmem:[#allocation2 + $0x18] sm:$0xff]  ;;  %v1239_v15 = vmov 7   ;;  %v178_v16 = vld [vmem:[#allocation2 + $0x20] sm:$0xff]  ;;  %v46_v49 = vshrl.u32 %v45_v47, 7 }
  0x16   :  { %v980_v14 = vpack.c.bf16 %v177_v13, %v176_v12  ;;  %v179_v17 = vld [vmem:[#allocation2 + $0x28] sm:$0xff]  ;;  %v180_v19 = vld [vmem:[#allocation2 + $0x30] sm:$0xff]  ;;  %v181_v20 = vld [vmem:[#allocation2 + $0x38] sm:$0xff]  ;;  %s1240_s18 = smov [#allocation5]  }
  0x17   :  { %977 = vmatprep.subr.bf16.mxu0 %v976_v11  ;;  %v984_v18 = vpack.c.bf16 %v179_v17, %v178_v16  ;;  %v988_v21 = vpack.c.bf16 %v181_v20, %v180_v19  ;;  %v182_v22 = vld [vmem:[#allocation2 + $0x40] sm:$0xff]  ;;  %v183_v23 = vld [vmem:[#allocation2 + $0x48] sm:$0xff]  ;;  %v184_v25 = vld [vmem:[#allocation2 + $0x50] sm:$0xff]  ;;  %v47_v52 = vsub.s32 0, %v46_v49  ;;  %v70_v57 = vsub.s32 1, %v46_v49  ;;  %s688_s19 = sshll.u32 %s1240_s18, 4  ;;  %s689_s19 = int_to_ptr.vmem [resolvable:$true] %s688_s19 }
  0x18   :  { %979 = vmatpush3.bf16.msra.mxu0 %v976_v11  ;;  %v992_v24 = vpack.c.bf16 %v183_v23, %v182_v22  ;;  %v185_v26 = vld [vmem:[#allocation2 + $0x58] sm:$0xff]  ;;  %v186_v28 = vld [vmem:[#allocation2 + $0x60] sm:$0xff]  ;;  %v187_v29 = vld [vmem:[#allocation2 + $0x68] sm:$0xff]  ;;  %v86_v58 = vsub.s32 2, %v46_v49  ;;  %v102_v60 = vsub.s32 3, %v46_v49  ;;  %s1203_s20 = scalar_lea.vmem %s689_s19, 256  ;;  %p1208_p9 = scmp.lt.s32.totalorder %s689_s19, %s689_s19 }
  0x19   :  { %65 = vperm.xlu1 %1149, %v33_v3   ;;  %42 = vperm.xlu0 %1148, %v33_v3   ;;  %v996_v27 = vpack.c.bf16 %v185_v26, %v184_v25  ;;  %v188_v30 = vld [vmem:[#allocation2 + $0x70] sm:$0xff]  ;;  %v1000_v31 = vpack.c.bf16 %v187_v29, %v186_v28  ;;  %v189_v32 = vld [vmem:[#allocation2 + $0x78] sm:$0xff]  ;;  %v276_v34 = vld [vmem:[#allocation2 + $0x80] sm:$0xff]  ;;  %v166_v26 = vsub.s32 7, %v46_v49  ;;  %p1204_p8 = scmp.ne.s32.totalorder %s689_s19, %s1203_s20  ;;  %p1209_p10 = scmp.lt.s32.totalorder %s1203_s20, %s1203_s20 }
  0x1a   :  { %981 = vmatprep.subr.bf16.mxu0 %v980_v14  ;;  %v1004_v33 = vpack.c.bf16 %v189_v32, %v188_v30  ;;  %v277_v35 = vld [vmem:[#allocation2 + $0x88] sm:$0xff]  ;;  %v278_v36 = vld [vmem:[#allocation2 + $0x90] sm:$0xff]  ;;  %v279_v38 = vld [vmem:[#allocation2 + $0x98] sm:$0xff] }
  0x1b   :  { %v1008_v37 = vpack.c.bf16 %v277_v35, %v276_v34  ;;  %v1012_v39 = vpack.c.bf16 %v279_v38, %v278_v36  ;;  %v280_v40 = vld [vmem:[#allocation2 + $0xa0] sm:$0xff]  ;;  %v281_v41 = vld [vmem:[#allocation2 + $0xa8] sm:$0xff]  ;;  %v282_v43 = vld [vmem:[#allocation2 + $0xb0] sm:$0xff]  ;;  %p1210_p11 = por %p1209_p10, %p1208_p9 }
  0x1c   :  { %983 = vmatpush3.bf16.msra.mxu0 %v980_v14  ;;  %v1016_v42 = vpack.c.bf16 %v281_v41, %v280_v40  ;;  %v283_v44 = vld [vmem:[#allocation2 + $0xb8] sm:$0xff]  ;;  %v34_v53 = vld [vmem:[%s1324_s1] sm:$0xff] }
  0x1d   :  { %1151 = vset.pattern.permute.xlu1 %v1234_v4  ;;  %1150 = vset.pattern.permute.xlu0 %v1234_v4  ;;  %v1020_v45 = vpack.c.bf16 %v283_v44, %v282_v43  ;;  %v48_v56 = vrot.slane %v34_v53, %v47_v52  ;;  %v700_v62 = vld [vmem:[%s1326_s3] ss:$0 sm:$0xff]  ;;  %v71_v0 = vrot.slane %v34_v53, %v70_v57  ;;  %v284_v52 = vld [vmem:[#allocation2 + $0xc0] sm:$0xff]  ;;  %p1211_p12 = pnand %p1210_p11, %p1204_p8 }
  0x1e   :  { %81 = vperm.xlu1 %1151, %v33_v3   ;;  %77 = vperm.xlu0 %1150, %v32_v2   ;;  %v167_v36 = vrot.slane %v34_v53, %v166_v26  ;;  %v391_v26 = vld [vmem:[#allocation2 + $0x168] sm:$0xff] }
  0x1f   :  { %985 = vmatprep.subr.bf16.mxu0 %v984_v18  ;;  %1009 = vmatprep.subr.bf16.mxu1 %v1008_v37 }
  0x20   :  { %987 = vmatpush3.bf16.msra.mxu0 %v984_v18  ;;  %1011 = vmatpush3.bf16.msra.mxu1 %v1008_v37  ;;  %v150_v18 = vsub.s32 6, %v46_v49 }
  0x21   :  { %989 = vmatprep.subr.bf16.mxu0 %v988_v21  ;;  %1013 = vmatprep.subr.bf16.mxu1 %v1012_v39 }
  0x22   :  { %1152 = vset.pattern.permute.xlu1 %v1235_v5  ;;  %1153 = vset.pattern.permute.xlu0 %v1235_v5  ;;  %v103_v5 = vrot.slane %v34_v53, %v102_v60  ;;  %v290_v60 = vld [vmem:[#allocation2 + $0xf0] sm:$0xff] }
  0x23   :  { %93 = vperm.xlu1 %1152, %v32_v2   ;;  %97 = vperm.xlu0 %1153, %v33_v3  }
  0x24   :  { %991 = vmatpush3.bf16.msra.mxu0 %v988_v21  ;;  %1015 = vmatpush3.bf16.msra.mxu1 %v1012_v39 }
  0x25   :  { %993 = vmatprep.subr.bf16.mxu0 %v992_v24  ;;  %1017 = vmatprep.subr.bf16.mxu1 %v1016_v42 }
  0x27   :  { %1154 = vset.pattern.permute.xlu1 %v1236_v6  ;;  %1155 = vset.pattern.permute.xlu0 %v1237_v7 }
  0x28   :  { %109 = vperm.xlu1 %1154, %v32_v2   ;;  %125 = vperm.xlu0 %1155, %v32_v2  }
  0x29   :  { %995 = vmatpush3.bf16.msra.mxu0 %v992_v24  ;;  %1019 = vmatpush3.bf16.msra.mxu1 %v1016_v42 }
  0x2a   :  { %997 = vmatprep.subr.bf16.mxu0 %v996_v27  ;;  %1021 = vmatprep.subr.bf16.mxu1 %v1020_v45 }
  0x2c   :  { %113 = vperm.xlu1 %1154, %v33_v3   ;;  %1158 = vset.pattern.permute.xlu0 %v1238_v10 }
  0x2d   :  { %145 = vperm.xlu0 %1158, %v33_v3   ;;  %999 = vmatpush3.bf16.msra.mxu0 %v996_v27  ;;  %v151_v27 = vrot.slane %v34_v53, %v150_v18 }
  0x2e   :  { %1001 = vmatprep.subr.bf16.mxu0 %v1000_v31  ;;  %1023 = vmatpush3.bf16.msra.mxu1 %v1020_v45 }
  0x30   :  { %1156 = vset.pattern.permute.xlu1 %v1237_v7  ;;  %v134_v7 = vsub.s32 5, %v46_v49 }
  0x31   :  { %129 = vperm.xlu1 %1156, %v33_v3   ;;  %1160 = vset.pattern.permute.xlu0 %v1239_v15 }
  0x32   :  { %1003 = vmatpush3.bf16.msra.mxu0 %v1000_v31  ;;  %v135_v16 = vrot.slane %v34_v53, %v134_v7  ;;  %v383_v7 = vld [vmem:[#allocation2 + $0x128] sm:$0xff] }
  0x33   :  { %1005 = vmatprep.subr.bf16.mxu0 %v1004_v33 }
  0x35   :  { %1157 = vset.pattern.permute.xlu1 %v1238_v10 }
  0x36   :  { %141 = vperm.xlu1 %1157, %v32_v2   ;;  %1007 = vmatpush3.bf16.msra.mxu0 %v1004_v33 }
  0x3a   :  { %1159 = vset.pattern.permute.xlu1 %v1239_v15 }
  0x3b   :  { %157 = vperm.xlu1 %1159, %v32_v2   ;;  %v87_v2 = vrot.slane %v34_v53, %v86_v58  ;;  %v288_v58 = vld [vmem:[#allocation2 + $0xe0] sm:$0xff] }
  0x3f   :  { %161 = vperm.xlu1 %1159, %v33_v3   ;;  %v118_v3 = vsub.s32 4, %v46_v49 }
  0x41   :  { %v119_v11 = vrot.slane %v34_v53, %v118_v3  ;;  %v285_v53 = vld [vmem:[#allocation2 + $0xc8] sm:$0xff] }
  0x94   :  { %v62_v46 = vpop.permute.xlu1 %61  ;;  %v38_v50 = vpop.permute.xlu0 %37 }
  0x95   :  { %v49_v59 = vmul.f32 %v48_v56, %v38_v50  ;;  %v72_v8 = vmul.f32 %v71_v0, %v62_v46 }
  0x97   :  { %v58_v4 = vadd.f32 %v700_v62, %v49_v59  ;;  %v289_v59 = vld [vmem:[#allocation2 + $0xe8] sm:$0xff] }
  0x98   :  { %v66_v48 = vpop.permute.xlu1 %65  ;;  %v43_v54 = vpop.permute.xlu0 %42 }
  0x99   :  { %v50_v1 = vmul.f32 %v48_v56, %v43_v54  ;;  %v73_v13 = vmul.f32 %v71_v0, %v66_v48  ;;  %v74_v14 = vadd.f32 %v72_v8, %v58_v4  ;;  %v1024_v54 = vpack.c.bf16 %v285_v53, %v284_v52  ;;  %v287_v56 = vld [vmem:[#allocation2 + $0xd8] sm:$0xff]  ;;  %v378_v0 = vld [vmem:[#allocation2 + $0x100] sm:$0xff]  ;;  %v490_v53 = vld [vmem:[#allocation2 + $0x1d0] sm:$0xff] }
  0x9a   :  { %v381_v4 = vld [vmem:[#allocation2 + $0x118] sm:$0xff] }
  0x9b   :  { %v59_v9 = vadd.f32 %v700_v62, %v50_v1  ;;  %1025 = vmatprep.subr.bf16.mxu1 %v1024_v54  ;;  %v291_v62 = vld [vmem:[#allocation2 + $0xf8] sm:$0xff]  ;;  %v379_v1 = vld [vmem:[#allocation2 + $0x108] sm:$0xff] }
  0x9c   :  { %1027 = vmatpush3.bf16.msra.mxu1 %v1024_v54  ;;  %v1040_v3 = vpack.c.bf16 %v379_v1, %v378_v0  ;;  %v491_v54 = vld [vmem:[#allocation2 + $0x1d8] sm:$0xff]  ;;  %v584_v0 = vld [vmem:[#allocation2 + $0x210] sm:$0xff] }
  0x9d   :  { %v82_v51 = vpop.permute.xlu1 %81  ;;  %v78_v63 = vpop.permute.xlu0 %77  ;;  %v75_v19 = vadd.f32 %v73_v13, %v59_v9  ;;  %v384_v9 = vld [vmem:[#allocation2 + $0x130] sm:$0xff] }
  0x9e   :  { %v88_v10 = vmul.f32 %v87_v2, %v78_v63  ;;  %v89_v20 = vmul.f32 %v87_v2, %v82_v51  ;;  %v1036_v63 = vpack.c.bf16 %v291_v62, %v290_v60  ;;  %v380_v2 = vld [vmem:[#allocation2 + $0x110] sm:$0xff]  ;;  %1041 = vmatprep.subr.bf16.mxu0 %v1040_v3  ;;  %v495_v60 = vld [vmem:[#allocation2 + $0x1f8] sm:$0xff]  ;;  %v582_v62 = vld [vmem:[#allocation2 + $0x200] sm:$0xff] }
  0xa0   :  { %v90_v21 = vadd.f32 %v88_v10, %v74_v14  ;;  %v91_v28 = vadd.f32 %v89_v20, %v75_v19  ;;  %v385_v10 = vld [vmem:[#allocation2 + $0x138] sm:$0xff]  ;;  %v386_v19 = vld [vmem:[#allocation2 + $0x140] sm:$0xff]  ;;  %v387_v20 = vld [vmem:[#allocation2 + $0x148] sm:$0xff] }
  0xa2   :  { %v94_v55 = vpop.permute.xlu1 %93  ;;  %v98_v12 = vpop.permute.xlu0 %97 }
  0xa3   :  { %v104_v15 = vmul.f32 %v103_v5, %v94_v55  ;;  %v105_v25 = vmul.f32 %v103_v5, %v98_v12  ;;  %v286_v55 = vld [vmem:[#allocation2 + $0xd0] sm:$0xff]  ;;  %v1044_v5 = vpack.c.bf16 %v381_v4, %v380_v2  ;;  %v702_v12 = vld [vmem:[%s1326_s3 + $0x1] ss:$0 sm:$0xff]  ;;  %v585_v2 = vld [vmem:[#allocation2 + $0x218] sm:$0xff] }
  0xa4   :  { %v1028_v57 = vpack.c.bf16 %v287_v56, %v286_v55  ;;  %v1092_v55 = vpack.c.bf16 %v491_v54, %v490_v53  ;;  %v492_v56 = vld [vmem:[#allocation2 + $0x1e0] sm:$0xff] }
  0xa5   :  { %v106_v24 = vadd.f32 %v104_v15, %v90_v21  ;;  %v107_v33 = vadd.f32 %v105_v25, %v91_v28  ;;  %v1056_v21 = vpack.c.bf16 %v387_v20, %v386_v19  ;;  %v390_v25 = vld [vmem:[#allocation2 + $0x160] sm:$0xff]  ;;  %v592_v20 = vld [vmem:[#allocation2 + $0x250] sm:$0xff] }
  0xa6   :  { %1029 = vmatprep.subr.bf16.mxu1 %v1028_v57  ;;  %v1064_v28 = vpack.c.bf16 %v391_v26, %v390_v25  ;;  %v586_v4 = vld [vmem:[#allocation2 + $0x220] sm:$0xff]  ;;  %v596_v25 = vld [vmem:[#allocation2 + $0x270] sm:$0xff] }
  0xa7   :  { %v110_v61 = vpop.permute.xlu1 %109  ;;  %v126_v23 = vpop.permute.xlu0 %125  ;;  %1031 = vmatpush3.bf16.msra.mxu1 %v1028_v57  ;;  %v493_v57 = vld [vmem:[#allocation2 + $0x1e8] sm:$0xff] }
  0xa8   :  { %v120_v22 = vmul.f32 %v119_v11, %v110_v61  ;;  %v136_v30 = vmul.f32 %v135_v16, %v126_v23  ;;  %v1032_v61 = vpack.c.bf16 %v289_v59, %v288_v58  ;;  %v389_v23 = vld [vmem:[#allocation2 + $0x158] sm:$0xff]  ;;  %v494_v58 = vld [vmem:[#allocation2 + $0x1f0] sm:$0xff]  ;;  %v1096_v59 = vpack.c.bf16 %v493_v57, %v492_v56 }
  0xaa   :  { %v122_v29 = vadd.f32 %v120_v22, %v106_v24  ;;  %1033 = vmatprep.subr.bf16.mxu1 %v1032_v61  ;;  %v388_v22 = vld [vmem:[#allocation2 + $0x150] sm:$0xff] }
  0xab   :  { %v114_v6 = vpop.permute.xlu1 %113  ;;  %1035 = vmatpush3.bf16.msra.mxu1 %v1032_v61  ;;  %v1060_v24 = vpack.c.bf16 %v389_v23, %v388_v22  ;;  %v1100_v61 = vpack.c.bf16 %v495_v60, %v494_v58  ;;  %v594_v23 = vld [vmem:[#allocation2 + $0x260] sm:$0xff] }
  0xac   :  { %v121_v31 = vmul.f32 %v119_v11, %v114_v6  ;;  %v146_v37 = vpop.permute.xlu0 %145  ;;  %v138_v38 = vadd.f32 %v136_v30, %v122_v29  ;;  %1037 = vmatprep.subr.bf16.mxu1 %v1036_v63  ;;  %v382_v6 = vld [vmem:[#allocation2 + $0x120] sm:$0xff]  ;;  %v1052_v11 = vpack.c.bf16 %v385_v10, %v384_v9  ;;  %v393_v29 = vld [vmem:[#allocation2 + $0x178] sm:$0xff]  ;;  %v706_v10 = vld [vmem:[%s1326_s3 + $0x3] ss:$0 sm:$0xff] }
  0xad   :  { %v153_v42 = vmul.f32 %v151_v27, %v146_v37  ;;  %v1048_v8 = vpack.c.bf16 %v383_v7, %v382_v6  ;;  %v484_v37 = vld [vmem:[#allocation2 + $0x1a0] sm:$0xff]  ;;  %v588_v7 = vld [vmem:[#allocation2 + $0x230] sm:$0xff] }
  0xae   :  { %v123_v39 = vadd.f32 %v121_v31, %v107_v33  ;;  %v480_v31 = vld [vmem:[#allocation2 + $0x180] sm:$0xff]  ;;  %v482_v33 = vld [vmem:[#allocation2 + $0x190] sm:$0xff] }
  0xaf   :  { %1039 = vmatpush3.bf16.msra.mxu1 %v1036_v63  ;;  %v583_v63 = vld [vmem:[#allocation2 + $0x208] sm:$0xff] }
  0xb0   :  { %v130_v17 = vpop.permute.xlu1 %129  ;;  %v1104_v1 = vpack.c.bf16 %v583_v63, %v582_v62 }
  0xb1   :  { %v137_v34 = vmul.f32 %v135_v16, %v130_v17 }
  0xb3   :  { %v139_v41 = vadd.f32 %v137_v34, %v123_v39 }
  0xb5   :  { %v142_v32 = vpop.permute.xlu1 %141  ;;  %v155_v47 = vadd.f32 %v153_v42, %v139_v41  ;;  %v487_v41 = vld [vmem:[#allocation2 + $0x1b8] sm:$0xff] }
  0xb6   :  { %v152_v35 = vmul.f32 %v151_v27, %v142_v32  ;;  %v392_v27 = vld [vmem:[#allocation2 + $0x170] sm:$0xff]  ;;  %v481_v32 = vld [vmem:[#allocation2 + $0x188] sm:$0xff] }
  0xb7   :  { %v1068_v30 = vpack.c.bf16 %v393_v29, %v392_v27  ;;  %v1072_v34 = vpack.c.bf16 %v481_v32, %v480_v31  ;;  %v597_v27 = vld [vmem:[#allocation2 + $0x278] sm:$0xff]  ;;  %v708_v29 = vld [vmem:[%s1326_s3 + $0x4] ss:$0 sm:$0xff] }
  0xb8   :  { %v154_v43 = vadd.f32 %v152_v35, %v138_v38  ;;  %v483_v35 = vld [vmem:[#allocation2 + $0x198] sm:$0xff]  ;;  %v485_v38 = vld [vmem:[#allocation2 + $0x1a8] sm:$0xff] }
  0xb9   :  { %1073 = vmatprep.subr.bf16.mxu1 %v1072_v34  ;;  %v1080_v39 = vpack.c.bf16 %v485_v38, %v484_v37 }
  0xba   :  { %v158_v40 = vpop.permute.xlu1 %157 }
  0xbb   :  { %v168_v44 = vmul.f32 %v167_v36, %v158_v40  ;;  %v486_v40 = vld [vmem:[#allocation2 + $0x1b0] sm:$0xff] }
  0xbc   :  { %v1084_v42 = vpack.c.bf16 %v487_v41, %v486_v40 }
  0xbd   :  { %v170_v45 = vadd.f32 %v168_v44, %v154_v43  ;;  %v704_v43 = vld [vmem:[%s1326_s3 + $0x2] ss:$0 sm:$0xff] }
  0xbe   :  { %v162_v46 = vpop.permute.xlu1 %161 }
  0xbf   :  { %v169_v48 = vmul.f32 %v167_v36, %v162_v46  ;;  %1161 = vtanh.f32 %v170_v45  ;;  %v1076_v36 = vpack.c.bf16 %v483_v35, %v482_v33 }
  0xc1   :  { %v171_v49 = vadd.f32 %v169_v48, %v155_v47 }
  0xc3   :  { %1163 = vtanh.f32 %v171_v49 }
  0xc9   :  { %v1162_v50 = vpop.eup %1161 }
  0xca   :  { %833 = vmatprep.mubr.f32.mxu0 %v1162_v50  ;;  %v488_v50 = vld [vmem:[#allocation2 + $0x1c0] sm:$0xff] }
  0xcd   :  { %v1164_v51 = vpop.eup %1163 }
  0xce   :  { %834 = vmatmul.mubr.f32.vlgmr.msra.gmra.mrb[0].mxu0 %v1164_v51  ;;  %v489_v51 = vld [vmem:[#allocation2 + $0x1c8] sm:$0xff] }
  0xcf   :  { %1043 = vmatpush3.bf16.msra.mxu0 %v1040_v3  ;;  %v1088_v52 = vpack.c.bf16 %v489_v51, %v488_v50  ;;  %v1108_v3 = vpack.c.bf16 %v585_v2, %v584_v0 }
  0xd0   :  { %1045 = vmatprep.subr.bf16.mxu0 %v1044_v5 }
  0xd3   :  { %1047 = vmatpush3.bf16.msra.mxu0 %v1044_v5  ;;  %v587_v5 = vld [vmem:[#allocation2 + $0x228] sm:$0xff] }
  0xd4   :  { %1049 = vmatprep.subr.bf16.mxu0 %v1048_v8  ;;  %v1112_v6 = vpack.c.bf16 %v587_v5, %v586_v4 }
  0xd7   :  { %1051 = vmatpush3.bf16.msra.mxu0 %v1048_v8  ;;  %v589_v8 = vld [vmem:[#allocation2 + $0x238] sm:$0xff] }
  0xd8   :  { %1053 = vmatprep.subr.bf16.mxu0 %v1052_v11  ;;  %v1116_v9 = vpack.c.bf16 %v589_v8, %v588_v7 }
  0xdb   :  { %1055 = vmatpush3.bf16.msra.mxu0 %v1052_v11 }
  0xdc   :  { %1057 = vmatprep.subr.bf16.mxu0 %v1056_v21 }
  0xdf   :  { %1059 = vmatpush3.bf16.msra.mxu0 %v1056_v21  ;;  %v593_v21 = vld [vmem:[#allocation2 + $0x258] sm:$0xff] }
  0xe0   :  { %1061 = vmatprep.subr.bf16.mxu0 %v1060_v24  ;;  %v1124_v22 = vpack.c.bf16 %v593_v21, %v592_v20 }
  0xe3   :  { %1063 = vmatpush3.bf16.msra.mxu0 %v1060_v24  ;;  %v595_v24 = vld [vmem:[#allocation2 + $0x268] sm:$0xff] }
  0xe4   :  { %1065 = vmatprep.subr.bf16.mxu0 %v1064_v28  ;;  %v1128_v26 = vpack.c.bf16 %v595_v24, %v594_v23 }
  0xe7   :  { %1067 = vmatpush3.bf16.msra.mxu0 %v1064_v28  ;;  %v1132_v28 = vpack.c.bf16 %v597_v27, %v596_v25 }
  0xe8   :  { %1069 = vmatprep.subr.bf16.mxu0 %v1068_v30 }
  0xeb   :  { %1071 = vmatpush3.bf16.msra.mxu0 %v1068_v30 }
  0xec   :  { %1105 = vmatprep.subr.bf16.mxu0 %v1104_v1 }
 0x1a1   :  { %v835_v13 = vpop.f32.mrb[0].mxu0 }
 0x1a2   :  { %v270_v14 = vadd.f32 %v835_v13, %v702_v12  ;;  %v264_v15 = vpop.f32.mrb[1].mxu0 }
 0x1a3   :  { %v265_v16 = vadd.f32 %v702_v12, %v264_v15 }
 0x1a5   :  { %1165 = vtanh.f32 %v265_v16 }
 0x1a6   :  { %1167 = vtanh.f32 %v270_v14 }
 0x1af   :  { %v1166_v17 = vpop.eup %1165 }
 0x1b0   :  { %v1168_v18 = vpop.eup %1167  ;;  %868 = vmatprep.mubr.f32.mxu1 %v1166_v17  ;;  %v590_v17 = vld [vmem:[#allocation2 + $0x240] sm:$0xff] }
 0x1b1   :  { %869 = vmatmul.mubr.f32.vlgmr.msra.gmra.mrb[0].mxu1 %v1168_v18  ;;  %v591_v18 = vld [vmem:[#allocation2 + $0x248] sm:$0xff] }
 0x1b2   :  { %1075 = vmatpush3.bf16.msra.mxu1 %v1072_v34  ;;  %v1120_v19 = vpack.c.bf16 %v591_v18, %v590_v17 }
 0x1b3   :  { %1077 = vmatprep.subr.bf16.mxu1 %v1076_v36 }
 0x1b6   :  { %1079 = vmatpush3.bf16.msra.mxu1 %v1076_v36  ;;  %v710_v36 = vld [vmem:[%s1326_s3 + $0x5] ss:$0 sm:$0xff] }
 0x1b7   :  { %1081 = vmatprep.subr.bf16.mxu1 %v1080_v39 }
 0x1ba   :  { %1083 = vmatpush3.bf16.msra.mxu1 %v1080_v39 }
 0x1bb   :  { %1085 = vmatprep.subr.bf16.mxu1 %v1084_v42 }
 0x1be   :  { %1087 = vmatpush3.bf16.msra.mxu1 %v1084_v42 }
 0x1bf   :  { %1089 = vmatprep.subr.bf16.mxu1 %v1088_v52 }
 0x1c2   :  { %1091 = vmatpush3.bf16.msra.mxu1 %v1088_v52 }
 0x1c3   :  { %1093 = vmatprep.subr.bf16.mxu1 %v1092_v55 }
 0x1c6   :  { %1095 = vmatpush3.bf16.msra.mxu1 %v1092_v55 }
 0x1c7   :  { %1097 = vmatprep.subr.bf16.mxu1 %v1096_v59 }
 0x1ca   :  { %1099 = vmatpush3.bf16.msra.mxu1 %v1096_v59 }
 0x1cb   :  { %1101 = vmatprep.subr.bf16.mxu1 %v1100_v61 }
 0x1ce   :  { %1103 = vmatpush3.bf16.msra.mxu1 %v1100_v61 }
 0x284   :  { %v870_v44 = vpop.f32.mrb[0].mxu1 }
 0x285   :  { %v372_v45 = vadd.f32 %v870_v44, %v704_v43  ;;  %v366_v46 = vpop.f32.mrb[1].mxu1 }
 0x286   :  { %v367_v47 = vadd.f32 %v704_v43, %v366_v46 }
 0x288   :  { %1169 = vtanh.f32 %v367_v47 }
 0x289   :  { %1171 = vtanh.f32 %v372_v45 }
 0x292   :  { %v1170_v48 = vpop.eup %1169 }
 0x293   :  { %v1172_v49 = vpop.eup %1171  ;;  %903 = vmatprep.mubr.f32.mxu0 %v1170_v48 }
 0x294   :  { %904 = vmatmul.mubr.f32.vlgmr.msra.gmra.mrb[2].mxu0 %v1172_v49 }
 0x295   :  { %1107 = vmatpush3.bf16.msra.mxu0 %v1104_v1 }
 0x296   :  { %1109 = vmatprep.subr.bf16.mxu0 %v1108_v3 }
 0x299   :  { %1111 = vmatpush3.bf16.msra.mxu0 %v1108_v3 }
 0x29a   :  { %1113 = vmatprep.subr.bf16.mxu0 %v1112_v6 }
 0x29d   :  { %1115 = vmatpush3.bf16.msra.mxu0 %v1112_v6 }
 0x29e   :  { %1117 = vmatprep.subr.bf16.mxu0 %v1116_v9 }
 0x2a1   :  { %1119 = vmatpush3.bf16.msra.mxu0 %v1116_v9 }
 0x2a2   :  { %1121 = vmatprep.subr.bf16.mxu0 %v1120_v19 }
 0x2a5   :  { %1123 = vmatpush3.bf16.msra.mxu0 %v1120_v19 }
 0x2a6   :  { %1125 = vmatprep.subr.bf16.mxu0 %v1124_v22 }
 0x2a9   :  { %1127 = vmatpush3.bf16.msra.mxu0 %v1124_v22 }
 0x2aa   :  { %1129 = vmatprep.subr.bf16.mxu0 %v1128_v26 }
 0x2ad   :  { %1131 = vmatpush3.bf16.msra.mxu0 %v1128_v26 }
 0x2ae   :  { %1133 = vmatprep.subr.bf16.mxu0 %v1132_v28 }
 0x2b1   :  { %1135 = vmatpush3.bf16.msra.mxu0 %v1132_v28 }
 0x367   :  { %v905_v11 = vpop.f32.mrb[2].mxu0 }
 0x368   :  { %v474_v12 = vadd.f32 %v905_v11, %v706_v10  ;;  %v468_v13 = vpop.f32.mrb[3].mxu0 }
 0x369   :  { %v469_v14 = vadd.f32 %v706_v10, %v468_v13 }
 0x36b   :  { %1173 = vtanh.f32 %v469_v14 }
 0x36c   :  { %1175 = vtanh.f32 %v474_v12 }
 0x375   :  { %v1174_v15 = vpop.eup %1173 }
 0x376   :  { %v1176_v16 = vpop.eup %1175  ;;  %938 = vmatprep.mubr.f32.mxu1 %v1174_v15 }
 0x377   :  { %939 = vmatmul.mubr.f32.vlgmr.msra.gmra.mrb[2].mxu1 %v1176_v16 }
 0x44a   :  { %v940_v30 = vpop.f32.mrb[2].mxu1 }
 0x44b   :  { %v576_v31 = vadd.f32 %v940_v30, %v708_v29  ;;  %v570_v32 = vpop.f32.mrb[3].mxu1 }
 0x44c   :  { %v571_v33 = vadd.f32 %v708_v29, %v570_v32 }
 0x44e   :  { %1177 = vtanh.f32 %v571_v33 }
 0x44f   :  { %1179 = vtanh.f32 %v576_v31 }
 0x458   :  { %v1178_v34 = vpop.eup %1177 }
 0x459   :  { %v1180_v35 = vpop.eup %1179  ;;  %973 = vmatprep.mubr.f32.mxu0 %v1178_v34 }
 0x45a   :  { %974 = vmatmul.mubr.f32.vlgmr.msra.gmra.mrb[4].mxu0 %v1180_v35 }
 0x52d   :  { %v975_v37 = vpop.f32.mrb[4].mxu0 }
 0x52e   :  { %v678_v38 = vadd.f32 %v975_v37, %v710_v36  ;;  %v672_v39 = vpop.f32.mrb[5].mxu0 }
 0x52f   :  { %v673_v40 = vadd.f32 %v710_v36, %v672_v39 }
 0x530   :  { %682 = vst [vmem:[#allocation5 + $0x8] sm:$0xff] %v678_v38 }
 0x531   :  { %681 = vst [vmem:[#allocation5] sm:$0xff] %v673_v40 }
 0x532   :  { %1214 = shalt.err (!%p1211_p12)
}
 0x533   :  { %s1215_s3 = scalar_lea.hbm %s1327_s4, 256 }
 0x534   :  { %p1216_p13 = scmp.ne.s32.totalorder %s1327_s4, %s1215_s3  ;;  %p1219_p0 = scmp.lt.u32.totalorder %s1215_s3, %s1327_s4 }
 0x536   :  { %p1221_p1 = pnand %p1219_p0, %p1216_p13 }
 0x538   :  { %1224 = shalt.err (!%p1221_p1)
}
 0x539   :  { %694 = dma.vmem_to_hbm [thread:$0]  %s689_s19, 256, %s1327_s4, [#allocation4], %s1230_s25, %s1230_s25, %s1231_s26  }
 0x53a   :  { %1227 = dma.done.wait [#allocation4], 256  }
 0x53b   :  { %1228 = vsyncadd [#allocation4], 4294967040 }
 0x53c   :  { %698 = vsyncpa [#allocation3], 1 }
 0x53d   :  { %699 = vsyncpa [#allocation4], 1 }

</bundles_post_ra>
